<compile_context>
chip_gen: v7x
topology: tpu7x:2x2x1
jax: 0.10.0
libtpu: 0.0.40
codegen_flags: <defaults>
</compile_context>

<pallas_src>
import functools

import jax
import jax.numpy as jnp
from jax import lax
from jax.experimental import pallas as pl
from jax.experimental.pallas import tpu as pltpu


def _round_up(n, m):
    return ((n + m - 1) // m) * m


# ----------------------------- Pallas kernel --------------------------------

def _topk_router_kernel(x_ref, w_ref, b_ref, wts_ref, idx_ref, psum_ref, *,
                        top_k, n_valid, tm):
    """Fused router for one tile of tokens.

    x_ref   : [tm, D]       token activations
    w_ref   : [D, E]        router weight (pre-transposed)
    b_ref   : [1, E]        router bias
    wts_ref : [tm, top_k]   normalized top-k gating weights (out)
    idx_ref : [tm, top_k]   top-k expert indices, int32 (out)
    psum_ref: [8, E]        per-tile sum over tokens of softmax probs (out,
                            identical value broadcast over the 8 sublanes)
    """
    # Router logits on the MXU, f32 accumulation.
    logits = jnp.dot(x_ref[...], w_ref[...], preferred_element_type=jnp.float32)
    logits = logits + b_ref[...].astype(jnp.float32)            # [tm, E]

    # Numerically stable softmax over experts (f32).
    m = jnp.max(logits, axis=-1, keepdims=True)
    e = jnp.exp(logits - m)
    denom = jnp.sum(e, axis=-1, keepdims=True)
    probs = e / denom                                            # [tm, E]

    E = probs.shape[-1]
    col = lax.broadcasted_iota(jnp.int32, probs.shape, 1)        # [tm, E]

    # Iterative top-k (top_k is small and static): per step take the row max,
    # record (value, first index with that value), then mask it out.
    work = probs
    vals = []
    idxs = []
    for _ in range(top_k):
        vmax = jnp.max(work, axis=-1, keepdims=True)             # [tm, 1]
        sel = work == vmax
        imax = jnp.min(jnp.where(sel, col, E), axis=-1, keepdims=True)
        vals.append(vmax)
        idxs.append(imax)
        work = jnp.where(col == imax, jnp.float32(-jnp.inf), work)

    topv = jnp.concatenate(vals, axis=-1)                        # [tm, top_k]
    topi = jnp.concatenate(idxs, axis=-1)                        # [tm, top_k]
    wsum = jnp.sum(topv, axis=-1, keepdims=True)
    wts_ref[...] = (topv / wsum).astype(wts_ref.dtype)
    idx_ref[...] = topi.astype(jnp.int32)

    # Partial per-expert probability sums for the aux loss.  Mask out padded
    # rows (tokens beyond the true N) so they don't pollute the statistics.
    row = lax.broadcasted_iota(jnp.int32, probs.shape, 0) + pl.program_id(0) * tm
    probs_valid = jnp.where(row < n_valid, probs, 0.0)
    tile_sum = jnp.sum(probs_valid, axis=0, keepdims=True)       # [1, E]
    psum_ref[...] = jnp.broadcast_to(tile_sum, psum_ref.shape).astype(psum_ref.dtype)


# ------------------------------ host wrapper ---------------------------------

def pallas_topk_router(x_flat, w_t, b, *, top_k, tm=256):
    """x_flat: [N, D], w_t: [D, E] (pre-transposed), b: [E].

    Returns (weights [N, top_k], indices [N, top_k] int32, psum [num_tiles, E]).
    """
    N, D = x_flat.shape
    D2, E = w_t.shape
    assert D == D2 and top_k <= E

    # Token tile size: multiple of 8, no bigger than (N rounded up to 8).
    tm = _round_up(max(8, min(tm, _round_up(N, 8))), 8)
    N_pad = _round_up(N, tm)
    if N_pad != N:
        x_flat = jnp.pad(x_flat, ((0, N_pad - N), (0, 0)))
    num_tiles = N_pad // tm

    b2 = b.reshape(1, E)
    kernel = functools.partial(_topk_router_kernel, top_k=top_k, n_valid=N, tm=tm)

    wts, idx, psum = pl.pallas_call(
        kernel,
        out_shape=(
            jax.ShapeDtypeStruct((N_pad, top_k), x_flat.dtype),
            jax.ShapeDtypeStruct((N_pad, top_k), jnp.int32),
            jax.ShapeDtypeStruct((num_tiles * 8, E), jnp.float32),
        ),
        grid=(num_tiles,),
        in_specs=[
            pl.BlockSpec((tm, D), lambda i: (i, 0)),   # x tile (streamed / pipelined)
            pl.BlockSpec((D, E), lambda i: (0, 0)),    # weight, resident across grid
            pl.BlockSpec((1, E), lambda i: (0, 0)),    # bias, resident across grid
        ],
        out_specs=(
            pl.BlockSpec((tm, top_k), lambda i: (i, 0)),
            pl.BlockSpec((tm, top_k), lambda i: (i, 0)),
            pl.BlockSpec((8, E), lambda i: (i, 0)),
        ),
        compiler_params=pltpu.CompilerParams(
            dimension_semantics=("parallel",)),
    )(x_flat, w_t, b2)

    # Row 0 of each 8-row psum block holds the per-tile expert sums.
    psum_tiles = psum.reshape(num_tiles, 8, E)[:, 0, :]
    return wts[:N], idx[:N], psum_tiles


def topk_router_forward(params, x, *, top_k, use_aux_loss=True, training=False,
                        tm=256):
    """Matches TopKRouter.forward(x): (expert_weights, expert_indices, aux_loss)."""
    B, T, D = x.shape
    wts, idx, psum_tiles = pallas_topk_router(
        x.reshape(B * T, D), params["w_t"], params["b"], top_k=top_k, tm=tm)
    expert_weights = wts.reshape(B, T, top_k)
    expert_indices = idx.reshape(B, T, top_k)

    aux_loss = jnp.float32(0.0)
    if use_aux_loss and training:
        # Tiny cross-tile reduction + coefficient of variation (plain JAX).
        experts = jnp.sum(psum_tiles, axis=0)                    # [E]
        fractions = experts / jnp.sum(experts)
        aux_loss = jnp.std(fractions, ddof=1) / jnp.mean(fractions)
    return expert_weights, expert_indices, aux_loss


# ------------------------------ JAX reference --------------------------------

def reference_forward(params, x, *, top_k, use_aux_loss=True, training=False):
    """Pure-JAX mirror of the PyTorch math, for correctness checking."""
    B, T, D = x.shape
    xf = x.reshape(-1, D)
    logits = xf @ params["w_t"] + params["b"]
    probs = jax.nn.softmax(logits, axis=-1)
    topv, topi = lax.top_k(probs, top_k)
    wts = topv / jnp.sum(topv, axis=-1, keepdims=True)
    aux = jnp.float32(0.0)
    if use_aux_loss and training:
        experts = probs.sum(axis=0)
        frac = experts / experts.sum()
        aux = jnp.std(frac, ddof=1) / jnp.mean(frac)             # torch.std is unbiased
    return wts.reshape(B, T, top_k), topi.reshape(B, T, top_k), aux


# ---------------------------------- main --------------------------------------

if __name__ == "__main__":
    B, T = 2, 8
    d_model = 32
    num_experts = 8
    top_k = 2

    key = jax.random.PRNGKey(0)
    k_x, k_w, k_b = jax.random.split(key, 3)

    # Router Linear params; weight stored PRE-TRANSPOSED as [d_model, num_experts]
    # (equivalent to torch's y = x @ W^T + b with W = w_t.T).
    params = {
        "w_t": jax.random.normal(k_w, (d_model, num_experts), jnp.float32)
               / (d_model ** 0.5),
        "b": 0.02 * jax.random.normal(k_b, (num_experts,), jnp.float32),
    }
    x = jax.random.normal(k_x, (B, T, d_model), jnp.float32)

    # Inference-mode forward (aux_loss == 0, like torch eval mode).
    w_out, i_out, aux_out = topk_router_forward(
        params, x, top_k=top_k, use_aux_loss=True, training=False, tm=8)
    w_out = jax.block_until_ready(w_out)

    w_ref, i_ref, _ = reference_forward(
        params, x, top_k=top_k, use_aux_loss=True, training=False)

    assert w_out.shape == (B, T, top_k)
    assert i_out.shape == (B, T, top_k)
    assert jnp.allclose(w_out, w_ref, rtol=1e-5, atol=1e-5), "weights mismatch"
    assert jnp.array_equal(i_out, i_ref), "indices mismatch"
    assert float(aux_out) == 0.0

    # Training-mode forward: also check the aux (load-balance) loss.
    w_tr, i_tr, aux_tr = topk_router_forward(
        params, x, top_k=top_k, use_aux_loss=True, training=True, tm=8)
    aux_tr = jax.block_until_ready(aux_tr)
    _, _, aux_ref = reference_forward(
        params, x, top_k=top_k, use_aux_loss=True, training=True)
    assert jnp.allclose(aux_tr, aux_ref, rtol=1e-4, atol=1e-5), "aux loss mismatch"

    print("KERNEL_OK")
</pallas_src>

<mosaic_0001>
module attributes {stable_mosaic.version = 11 : i64} {
  func.func @_topk_router_kernel(%arg0: i32, %arg1: memref<8x32xf32, #tpu.memory_space<vmem>>, %arg2: memref<32x8xf32, #tpu.memory_space<vmem>>, %arg3: memref<1x8xf32, #tpu.memory_space<vmem>>, %arg4: memref<8x2xf32, #tpu.memory_space<vmem>>, %arg5: memref<8x2xi32, #tpu.memory_space<vmem>>, %arg6: memref<8x8xf32, #tpu.memory_space<vmem>>) attributes {dimension_semantics = [#tpu.dimension_semantics<parallel>], iteration_bounds = array<i64: 2>, scalar_prefetch = 0 : i64, scratch_operands = 0 : i64, tpu.core_type = #tpu.core_type<tc>, window_params = [{transform_indices = @transform_0, window_bounds = array<i64: 8, 32>}, {pipeline_mode = #tpu.pipeline_mode<synchronous>, transform_indices = @transform_1, window_bounds = array<i64: 32, 8>}, {pipeline_mode = #tpu.pipeline_mode<synchronous>, transform_indices = @transform_2, window_bounds = array<i64: 1, 8>}, {transform_indices = @transform_3, window_bounds = array<i64: 8, 2>}, {transform_indices = @transform_4, window_bounds = array<i64: 8, 2>}, {transform_indices = @transform_5, window_bounds = array<i64: 8, 8>}]} {
    %c0 = arith.constant 0 : index
    %c0_0 = arith.constant 0 : index
    %0 = vector.load %arg1[%c0, %c0_0] : memref<8x32xf32, #tpu.memory_space<vmem>>, vector<8x32xf32>
    %c0_1 = arith.constant 0 : index
    %c0_2 = arith.constant 0 : index
    %1 = vector.load %arg2[%c0_1, %c0_2] : memref<32x8xf32, #tpu.memory_space<vmem>>, vector<32x8xf32>
    %cst = arith.constant dense<0.000000e+00> : vector<8x8xf32>
    %2 = tpu.matmul %0, %1, %cst {dimension_numbers = #tpu.dot_dimension_numbers<[1], [0], [0], [1], [0, 0, 1, 1], [], []>} : vector<8x32xf32>, vector<32x8xf32>, vector<8x8xf32> -> vector<8x8xf32>
    %c0_3 = arith.constant 0 : index
    %c0_4 = arith.constant 0 : index
    %3 = vector.load %arg3[%c0_3, %c0_4] : memref<1x8xf32, #tpu.memory_space<vmem>>, vector<1x8xf32>
    %4 = vector.broadcast %3 : vector<1x8xf32> to vector<8x8xf32>
    %5 = arith.addf %2, %4 : vector<8x8xf32>
    %cst_5 = arith.constant dense<0xFF800000> : vector<8xf32>
    %6 = vector.multi_reduction <maximumf>, %5, %cst_5 [1] : vector<8x8xf32> to vector<8xf32>
    %7 = vector.shape_cast %6 : vector<8xf32> to vector<8x1xf32>
    %8 = vector.broadcast %7 : vector<8x1xf32> to vector<8x8xf32>
    %9 = arith.subf %5, %8 : vector<8x8xf32>
    %10 = math.exp %9 : vector<8x8xf32>
    %cst_6 = arith.constant dense<0.000000e+00> : vector<8xf32>
    %11 = vector.multi_reduction <add>, %10, %cst_6 [1] : vector<8x8xf32> to vector<8xf32>
    %12 = vector.shape_cast %11 : vector<8xf32> to vector<8x1xf32>
    %13 = vector.broadcast %12 : vector<8x1xf32> to vector<8x8xf32>
    %14 = arith.divf %10, %13 : vector<8x8xf32>
    %15 = tpu.iota {dimensions = array<i32: 1>} : vector<8x8xi32>
    %cst_7 = arith.constant dense<0xFF800000> : vector<8xf32>
    %16 = vector.multi_reduction <maximumf>, %14, %cst_7 [1] : vector<8x8xf32> to vector<8xf32>
    %17 = vector.shape_cast %16 : vector<8xf32> to vector<8x1xf32>
    %18 = vector.broadcast %17 : vector<8x1xf32> to vector<8x8xf32>
    %19 = arith.cmpf oeq, %14, %18 : vector<8x8xf32>
    %c8_i32 = arith.constant 8 : i32
    %20 = vector.broadcast %c8_i32 : i32 to vector<8x8xi32>
    %21 = arith.select %19, %15, %20 : vector<8x8xi1>, vector<8x8xi32>
    %cst_8 = arith.constant dense<2147483647> : vector<8xi32>
    %22 = vector.multi_reduction <minsi>, %21, %cst_8 [1] : vector<8x8xi32> to vector<8xi32>
    %23 = vector.shape_cast %22 : vector<8xi32> to vector<8x1xi32>
    %24 = vector.broadcast %23 : vector<8x1xi32> to vector<8x8xi32>
    %25 = arith.cmpi eq, %15, %24 : vector<8x8xi32>
    %cst_9 = arith.constant 0xFF800000 : f32
    %26 = vector.broadcast %cst_9 : f32 to vector<8x8xf32>
    %27 = arith.select %25, %26, %14 : vector<8x8xi1>, vector<8x8xf32>
    %cst_10 = arith.constant dense<0xFF800000> : vector<8xf32>
    %28 = vector.multi_reduction <maximumf>, %27, %cst_10 [1] : vector<8x8xf32> to vector<8xf32>
    %29 = vector.shape_cast %28 : vector<8xf32> to vector<8x1xf32>
    %30 = vector.broadcast %29 : vector<8x1xf32> to vector<8x8xf32>
    %31 = arith.cmpf oeq, %27, %30 : vector<8x8xf32>
    %c8_i32_11 = arith.constant 8 : i32
    %32 = vector.broadcast %c8_i32_11 : i32 to vector<8x8xi32>
    %33 = arith.select %31, %15, %32 : vector<8x8xi1>, vector<8x8xi32>
    %cst_12 = arith.constant dense<2147483647> : vector<8xi32>
    %34 = vector.multi_reduction <minsi>, %33, %cst_12 [1] : vector<8x8xi32> to vector<8xi32>
    %35 = vector.shape_cast %34 : vector<8xi32> to vector<8x1xi32>
    %36 = tpu.concatenate %17, %29 in 1 : vector<8x1xf32>, vector<8x1xf32> -> vector<8x2xf32>
    %37 = tpu.concatenate %23, %35 in 1 : vector<8x1xi32>, vector<8x1xi32> -> vector<8x2xi32>
    %cst_13 = arith.constant dense<0.000000e+00> : vector<8xf32>
    %38 = vector.multi_reduction <add>, %36, %cst_13 [1] : vector<8x2xf32> to vector<8xf32>
    %39 = vector.shape_cast %38 : vector<8xf32> to vector<8x1xf32>
    %40 = vector.broadcast %39 : vector<8x1xf32> to vector<8x2xf32>
    %41 = arith.divf %36, %40 : vector<8x2xf32>
    %c0_14 = arith.constant 0 : index
    %c0_15 = arith.constant 0 : index
    %42 = vector.load %arg4[%c0_14, %c0_15] : memref<8x2xf32, #tpu.memory_space<vmem>>, vector<8x2xf32>
    tpu.vector_store %arg4[%c0_14, %c0_15], %41 {strides = array<i32>} : memref<8x2xf32, #tpu.memory_space<vmem>>, vector<8x2xf32>,
    %c0_16 = arith.constant 0 : index
    %c0_17 = arith.constant 0 : index
    %43 = vector.load %arg5[%c0_16, %c0_17] : memref<8x2xi32, #tpu.memory_space<vmem>>, vector<8x2xi32>
    tpu.vector_store %arg5[%c0_16, %c0_17], %37 {strides = array<i32>} : memref<8x2xi32, #tpu.memory_space<vmem>>, vector<8x2xi32>,
    %44 = tpu.iota {dimensions = array<i32: 0>} : vector<8x8xi32>
    %c8_i32_18 = arith.constant 8 : i32
    %45 = arith.muli %arg0, %c8_i32_18 : i32
    %46 = vector.broadcast %45 : i32 to vector<8x8xi32>
    %47 = arith.addi %44, %46 : vector<8x8xi32>
    %c16_i32 = arith.constant 16 : i32
    %48 = vector.broadcast %c16_i32 : i32 to vector<8x8xi32>
    %49 = arith.cmpi slt, %47, %48 : vector<8x8xi32>
    %cst_19 = arith.constant 0.000000e+00 : f32
    %50 = vector.broadcast %cst_19 : f32 to vector<8x8xf32>
    %51 = arith.select %49, %14, %50 : vector<8x8xi1>, vector<8x8xf32>
    %cst_20 = arith.constant dense<0.000000e+00> : vector<8xf32>
    %52 = vector.multi_reduction <add>, %51, %cst_20 [0] : vector<8x8xf32> to vector<8xf32>
    %53 = vector.shape_cast %52 : vector<8xf32> to vector<1x8xf32>
    %54 = vector.shape_cast %53 : vector<1x8xf32> to vector<1x8xf32>
    %55 = vector.broadcast %54 : vector<1x8xf32> to vector<8x8xf32>
    %c0_21 = arith.constant 0 : index
    %c0_22 = arith.constant 0 : index
    %56 = vector.load %arg6[%c0_21, %c0_22] : memref<8x8xf32, #tpu.memory_space<vmem>>, vector<8x8xf32>
    tpu.vector_store %arg6[%c0_21, %c0_22], %55 {strides = array<i32>} : memref<8x8xf32, #tpu.memory_space<vmem>>, vector<8x8xf32>,
    return
  }
  func.func @transform_0(%arg0: i32) -> (i32, i32) {
    %c0_i32 = arith.constant 0 : i32
    %c0_i32_0 = arith.constant 0 : i32
    return %arg0, %c0_i32 : i32, i32
  }
  func.func @transform_1(%arg0: i32) -> (i32, i32) {
    %c0_i32 = arith.constant 0 : i32
    %c0_i32_0 = arith.constant 0 : i32
    %c0_i32_1 = arith.constant 0 : i32
    return %c0_i32, %c0_i32_0 : i32, i32
  }
  func.func @transform_2(%arg0: i32) -> (i32, i32) {
    %c0_i32 = arith.constant 0 : i32
    %c0_i32_0 = arith.constant 0 : i32
    %c0_i32_1 = arith.constant 0 : i32
    return %c0_i32, %c0_i32_0 : i32, i32
  }
  func.func @transform_3(%arg0: i32) -> (i32, i32) {
    %c0_i32 = arith.constant 0 : i32
    %c0_i32_0 = arith.constant 0 : i32
    return %arg0, %c0_i32 : i32, i32
  }
  func.func @transform_4(%arg0: i32) -> (i32, i32) {
    %c0_i32 = arith.constant 0 : i32
    %c0_i32_0 = arith.constant 0 : i32
    return %arg0, %c0_i32 : i32, i32
  }
  func.func @transform_5(%arg0: i32) -> (i32, i32) {
    %c0_i32 = arith.constant 0 : i32
    %c0_i32_0 = arith.constant 0 : i32
    return %arg0, %c0_i32 : i32, i32
  }
}

</mosaic_0001>

<bundles_post_ra>
// kernel: tpu_custom_call.1
= control target key start
LH: loop header
LB: loop body
LE: loop exit
PB: predicated region body
PF: predicated region fallthrough
CT: control target
= control target key end

     0   :  { %s618_s18 = smov 0   ;;  %s680_s0 = inlined_call_operand.vmem [shape: f32[16,32], index: 0, kind: input, shape index: {}]   ;;  %s681_s1 = inlined_call_operand.vmem [shape: f32[32,8], index: 1, kind: input, shape index: {}]   ;;  %s682_s2 = inlined_call_operand.vmem [shape: f32[1,8], index: 2, kind: input, shape index: {}]   ;;  %s683_s3 = inlined_call_operand.vmem [shape: f32[16,2], index: 3, kind: output, shape index: {0}]   ;;  %s684_s4 = inlined_call_operand.vmem [shape: s32[16,2], index: 4, kind: output, shape index: {1}]   ;;  %s685_s5 = inlined_call_operand.vmem [shape: f32[16,8], index: 5, kind: output, shape index: {2}]  }
   0x1 LB: > { %s624_s19 = sadd.s32 4294967295, %s583_s18   ;;  %p528_p0 = scmp.ge.s32.totalorder %s583_s18, 1  ;;  %s583_s18 = sphi %s618_s18, %s16_s18  }
   0x2   : > { %p191_p1 = scmp.lt.s32.totalorder %s583_s18, 3 }
   0x4   : > { %p192_p2 = pnand %p528_p0, %p191_p1 }
   0x5   : > { %v242_v0 = vld [vmem:[%s681_s1] sm:$0xff] (!%p192_p2)  ;;  %v243_v1 = vld [vmem:[%s681_s1 + $0x8] sm:$0xff] (!%p192_p2)  ;;  %v244_v2 = vld [vmem:[%s681_s1 + $0x10] sm:$0xff] (!%p192_p2)  ;;  %v585_v3 = vmov (!%p192_p2), 0.0|0.0   ;;  %vm586_vm0 = vmmov (!%p192_p2), 0   ;;  %v587_v6 = vmov (!%p192_p2), 0.0   ;;  %v339_v19 = vlaneseq (!%p192_p2) }
   0x6   : > { %195 = sbr.rel (%p192_p2) target bundleno = 1430 (0x596), region = 32  ;;  %554 = vmatprep.subr.bf16.mxu0 (!%p192_p2), %v585_v3  ;;  %v555_v4 = vpack.c.bf16 (!%p192_p2), %v243_v1, %v242_v0  ;;  %v245_v5 = vld [vmem:[%s681_s1 + $0x18] sm:$0xff] (!%p192_p2)  ;;  %551 = vmatprep.mubr.msk.f32.mxu0 (!%p192_p2), %vm586_vm0, %v587_v6  ;;  %p225_p3 = scmp.lt.s32.totalorder (!%p192_p2), %s624_s19, 1  ;;  %vm253_vm1 = vcmask (!%p192_p2), 261120   ;;  %v533_v9 = vld [vmem:[%s682_s2] ss:$0 sm:$0xff] (!%p192_p2) }
   0x7   : > { %v558_v7 = vpack.c.bf16 (!%p192_p2), %v245_v5, %v244_v2  ;;  %vm327_vm2 = vcmask (!%p192_p2), 64512   ;;  %s535_s10 = sshll.u32 (!%p192_p2), %s624_s19, 3  ;;  %v395_v21 = vshrl.u32 (!%p192_p2), %v339_v19, 7  ;;  %v340_v35 = vand.u32 (!%p192_p2), 127, %v339_v19 }
   0x8   : > { %556 = vmatpush3.bf16.msra.mxu0 (!%p192_p2), %v555_v4  ;;  %v397_v22 = vstv (!%p192_p2), %s535_s10  ;;  %vm383_vm7 = vcmask (!%p192_p2), 7168   ;;  %vm386_vm8 = vcmask (!%p192_p2), 15360  }
   0x9   : > { %557 = vmatprep.subr.bf16.mxu0 (!%p192_p2), %v585_v3  ;;  %v398_v23 = vadd.s32 (!%p192_p2), %v397_v22, %v395_v21 }
   0xb   : > { %vm399_vm3 = vcmp.lt.s32.totalorder (!%p192_p2), %v398_v23, 16 }
   0xc   : > { %559 = vmatpush3.bf16.msra.mxu0 (!%p192_p2), %v558_v7 }
   0xd   : > { %s226_s28 = scalar_select %p225_p3, %s624_s19, 1 }
   0xf   : > { %s642_s29 = sshll.u32 %s226_s28, 3 }
  0x10   : > { %s228_s7 = scalar_lea.vmem %s680_s0, %s642_s29  ;;  %s240_s13 = scalar_lea.vmem %s685_s5, %s642_s29 }
  0x11   : > { %v241_v8 = vld [vmem:[%s228_s7] sm:$0xff]  ;;  %s232_s16 = scalar_lea.vmem %s683_s3, %s642_s29  ;;  %s236_s20 = scalar_lea.vmem %s684_s4, %s642_s29 }
  0x12   : > { %552 = vmatmul.mubr.msk.f32.vlgmr.msra.gmra.mrb[0].mxu0 %vm253_vm1, %v241_v8 }
  0xe5   : > { %v323_v10 = vpop.f32.mrb[0].mxu0 }
  0xe6   : > { %v324_v11 = vadd.f32 %v533_v9, %v323_v10  ;;  %v553_v12 = vpop.f32.mrb[1].mxu0 }
  0xe8   : > { %v328_v13 = vsel %vm327_vm2, %v324_v11, -inf }
  0xe9   : > { %329 = vmax.xlane.f32.xlu0 %v328_v13 }
 0x176   : > { %v330_v14 = vpop.xlane.xlu0 %329 }
 0x177   : > { %v331_v15 = vsub.f32 %v324_v11, %v330_v14 }
 0x179   : > { %v332_v16 = vmul.f32 1.442695, %v331_v15 }
 0x17b   : > { %571 = vpow2.f32 %v332_v16 }
 0x185   : > { %v572_v17 = vpop.eup %571 }
 0x186   : > { %v334_v18 = vsel %vm327_vm2, %v572_v17, 0.0 }
 0x187   : > { %335 = vadd.xlane.f32.xlu0 %v334_v18 }
 0x214   : > { %v336_v20 = vpop.xlane.xlu0 %335 }
 0x215   : > { %573 = vrcp.f32 %v336_v20 }
 0x21f   : > { %v574_v24 = vpop.eup %573 }
 0x220   : > { %v338_v25 = vmul.f32 %v574_v24, %v572_v17 }
 0x222   : > { %v341_v26 = vsel %vm327_vm2, %v338_v25, -inf  ;;  %v400_v27 = vsel %vm399_vm3, %v338_v25, 0.0 }
 0x223   : > { %342 = vmax.xlane.f32.xlu1 %v341_v26  ;;  %v401_v28 = vsel %vm327_vm2, %v400_v27, 0.0 }
 0x224   : > { %v402_v29 = vrot.slane %v401_v28, 4 }
 0x226   : > { %v403_v30 = vadd.f32 %v402_v29, %v401_v28 }
 0x228   : > { %v404_v31 = vrot.slane %v403_v30, 2 }
 0x22a   : > { %v405_v32 = vadd.f32 %v404_v31, %v403_v30 }
 0x22c   : > { %v406_v33 = vrot.slane %v405_v32, 1 }
 0x22e   : > { %v407_v34 = vadd.f32 %v406_v33, %v405_v32 }
 0x230   : > { %408 = vst.msk [vmem:[%s240_s13] sm:$0xff] %vm327_vm2, %v407_v34 }
 0x2b0   : > { %v343_v36 = vpop.xlane.xlu1 %342 }
 0x2b1   : > { %vm344_vm4 = vcmp.eq.f32.partialorder %v338_v25, %v343_v36 }
 0x2b2   : > { %v345_v37 = vsel %vm344_vm4, %v340_v35, 8 }
 0x2b3   : > { %v346_v38 = vsel %vm327_vm2, %v345_v37, 2147483647 }
 0x2b4   : > { %v348_v39 = vshra.s32 %v346_v38, 16  ;;  %v347_v41 = vand.u32 65535, %v346_v38 }
 0x2b6   : > { %v350_v40 = vcvt.s32.f32 %v348_v39  ;;  %v349_v43 = vcvt.s32.f32 %v347_v41 }
 0x2b8   : > { %351 = vmin.xlane.f32.xlu1 %v350_v40 }
 0x345   : > { %v352_v42 = vpop.xlane.xlu1 %351 }
 0x346   : > { %vm353_vm5 = vcmp.eq.f32.partialorder %v350_v40, %v352_v42  ;;  %v358_v45 = vcvt.f32.s32 %v352_v42 }
 0x347   : > { %v354_v44 = vsel %vm353_vm5, %v349_v43, inf }
 0x348   : > { %355 = vmin.xlane.f32.xlu0 %v354_v44  ;;  %v359_v47 = vshll.u32 %v358_v45, 16 }
 0x3d5   : > { %v356_v46 = vpop.xlane.xlu0 %355 }
 0x3d6   : > { %v357_v48 = vcvt.f32.s32 %v356_v46 }
 0x3d8   : > { %v360_v49 = vadd.s32 %v359_v47, %v357_v48 }
 0x3da   : > { %vm361_vm6 = vcmp.eq.s32.totalorder %v340_v35, %v360_v49 }
 0x3db   : > { %v362_v50 = vsel %vm361_vm6, -inf, %v338_v25 }
 0x3dc   : > { %v363_v51 = vsel %vm327_vm2, %v362_v50, -inf }
 0x3dd   : > { %364 = vmax.xlane.f32.xlu1 %v363_v51 }
 0x46a   : > { %v365_v52 = vpop.xlane.xlu1 %364 }
 0x46b   : > { %vm366_vm9 = vcmp.eq.f32.partialorder %v362_v50, %v365_v52  ;;  %v384_v53 = vsel %vm383_vm7, %v343_v36, %v365_v52 }
 0x46c   : > { %v367_v54 = vsel %vm366_vm9, %v340_v35, 8  ;;  %v387_v55 = vsel %vm386_vm8, %v384_v53, 0.0 }
 0x46d   : > { %388 = vadd.xlane.f32.xlu1 %v387_v55  ;;  %v368_v56 = vsel %vm327_vm2, %v367_v54, 2147483647 }
 0x46e   : > { %v370_v57 = vshra.s32 %v368_v56, 16  ;;  %v369_v60 = vand.u32 65535, %v368_v56 }
 0x470   : > { %v372_v58 = vcvt.s32.f32 %v370_v57  ;;  %v371_v62 = vcvt.s32.f32 %v369_v60 }
 0x472   : > { %373 = vmin.xlane.f32.xlu0 %v372_v58 }
 0x4fa   : > { %v389_v59 = vpop.xlane.xlu1 %388 }
 0x4fb   : > { %575 = vrcp.f32 %v389_v59 }
 0x4ff   : > { %v374_v61 = vpop.xlane.xlu0 %373 }
 0x500   : > { %vm375_vm10 = vcmp.eq.f32.partialorder %v372_v58, %v374_v61  ;;  %v380_v2 = vcvt.f32.s32 %v374_v61 }
 0x501   : > { %v376_v63 = vsel %vm375_vm10, %v371_v62, inf }
 0x502   : > { %377 = vmin.xlane.f32.xlu0 %v376_v63  ;;  %v381_v4 = vshll.u32 %v380_v2, 16 }
 0x505   : > { %v576_v0 = vpop.eup %575 }
 0x506   : > { %v391_v1 = vmul.f32 %v576_v0, %v384_v53 }
 0x508   : > { %392 = vst.msk [vmem:[%s232_s16] sm:$0xff] %vm386_vm8, %v391_v1 }
 0x58f   : > { %v378_v3 = vpop.xlane.xlu0 %377 }
 0x590   : > { %v379_v5 = vcvt.f32.s32 %v378_v3 }
 0x592   : > { %v382_v6 = vadd.s32 %v381_v4, %v379_v5 }
 0x594   : > { %v385_v7 = vsel %vm383_vm7, %v360_v49, %v382_v6 }
 0x595   : > { %393 = vst.msk [vmem:[%s236_s20] sm:$0xff] %vm386_vm8, %v385_v7 }
 0x596 PF: > { %s16_s18 = sadd.s32 1, %s583_s18  }
 0x597   : > { %p13_p4 = scmp.ge.s32.totalorder %s16_s18, 4  }
 0x599   :  { %15 = sbr.rel (!%p13_p4) target bundleno = 1 (0x1), region = 86 }

</bundles_post_ra>
